<compile_context>
chip_gen: v7x
topology: tpu7x:2x2x1
jax: 0.10.0
libtpu: 0.0.40
codegen_flags: <defaults>
</compile_context>

<pallas_src>
import functools

import jax
import jax.numpy as jnp
from jax.experimental import pallas as pl
from jax.experimental.pallas import tpu as pltpu


# ----------------------------------------------------------------------------
# Parameter setup (equivalent of generate_anchors / set_cell_anchors) — glue.
# ----------------------------------------------------------------------------
def generate_anchors(scales, aspect_ratios, dtype=jnp.float32):
    scales = jnp.asarray(scales, dtype=dtype)
    aspect_ratios = jnp.asarray(aspect_ratios, dtype=dtype)
    h_ratios = jnp.sqrt(aspect_ratios)
    w_ratios = 1.0 / h_ratios
    ws = (w_ratios[:, None] * scales[None, :]).reshape(-1)
    hs = (h_ratios[:, None] * scales[None, :]).reshape(-1)
    base_anchors = jnp.stack([-ws, -hs, ws, hs], axis=1) / 2.0
    return jnp.round(base_anchors)  # round-half-to-even, same as torch.round


# ----------------------------------------------------------------------------
# Pure-JAX reference / fallback (mirrors torch grid_anchors exactly).
# Used for verification and for small feature maps where a pallas_call launch
# would be pure overhead.
# ----------------------------------------------------------------------------
def _grid_anchors_ref(base_anchors, gh, gw, sh, sw):
    shifts_x = jnp.arange(0, gw, dtype=jnp.float32) * sw
    shifts_y = jnp.arange(0, gh, dtype=jnp.float32) * sh
    shift_y, shift_x = jnp.meshgrid(shifts_y, shifts_x, indexing="ij")
    shift_x = shift_x.reshape(-1)
    shift_y = shift_y.reshape(-1)
    shifts = jnp.stack([shift_x, shift_y, shift_x, shift_y], axis=1)
    return (shifts[:, None, :] + base_anchors[None, :, :]).reshape(-1, 4)


# ----------------------------------------------------------------------------
# Hardware heuristics (safe fallbacks if the device can't be queried).
# ----------------------------------------------------------------------------
@functools.lru_cache(maxsize=1)
def _device_kind():
    try:
        return (getattr(jax.devices()[0], "device_kind", "") or "").lower()
    except Exception:
        return ""


@functools.lru_cache(maxsize=1)
def _num_tensorcores_per_chip():
    k = _device_kind()
    # v7x (and older megacore parts) expose 2 TensorCores per device;
    # v5e / v6e have a single TensorCore.
    if any(t in k for t in ("v7", "7x", "v3", "v4")):
        return 2
    return 1


@functools.lru_cache(maxsize=1)
def _min_pallas_bytes():
    # Below this output size the kernel is 100% dispatch overhead; on v5e
    # (lowest HBM bandwidth, 1 vst slot) use a larger threshold.
    k = _device_kind()
    if "v5 lite" in k or "v5e" in k or "v5lite" in k:
        return 1 << 20
    return 512 * 1024


# ----------------------------------------------------------------------------
# Pallas kernel: the grid_anchors hot path, lane-dense row-tiled layout.
# The per-level slab is emitted as (gh, gw*A*4) float32 — last dim lane-dense
# (hundreds/thousands of lanes) so stores are full-vreg vst; the wrapper's
# reshape to (gh*gw*A, 4) reproduces torch's row ordering exactly.
# ----------------------------------------------------------------------------
_DEFAULT_BLOCK_BYTES = 2 * 1024 * 1024   # per-block output budget


def _choose_row_tile(gh, W, num_tc, block_bytes):
    if num_tc >= 2 and gh >= 16:
        # >= 2 row tiles so the "parallel" grid axis actually shards the store
        # work across both TensorCores.
        th = max(8, (pl.cdiv(gh, num_tc) // 8) * 8)
    else:
        # Single TensorCore: extra grid steps on a store-bound kernel are pure
        # pipeline overhead — emit the whole level as one output block.
        th = gh
    # Respect the per-block VMEM budget (matters only for huge levels / tests).
    cap = max(8, ((block_bytes // (W * 4)) // 8) * 8)
    if th > cap:
        th = cap
    return min(th, gh)


def _grid_anchors_pallas(base_anchors, gh, gw, sh, sw, *,
                         block_bytes=_DEFAULT_BLOCK_BYTES, num_tc=None):
    """Returns anchors of shape (gh * gw * A, 4), float32."""
    A = int(base_anchors.shape[0])
    W = gw * A * 4                      # lane-dense last dim
    if num_tc is None:
        num_tc = _num_tensorcores_per_chip()
    th = _choose_row_tile(gh, W, num_tc, block_bytes)
    grid = (pl.cdiv(gh, th),)

    # Wrapper-side precompute (cached across forwards by the caller):
    #   row 0: base anchors + x-shift pattern (value of grid row y == 0)
    #   row 1: per-column y-mask with the y-stride already folded in
    # so the kernel is  out = tmpl + global_row * ymask_stride  with no
    # captured scalars (the previous version closed over jnp.float32(sh),
    # which pallas_call rejects).
    base = base_anchors.astype(jnp.float32)
    shift_x = jnp.arange(gw, dtype=jnp.float32) * float(sw)            # (gw,)
    xsel = jnp.array([1.0, 0.0, 1.0, 0.0], dtype=jnp.float32)          # cols 0,2
    ysel = jnp.array([0.0, 1.0, 0.0, 1.0], dtype=jnp.float32)          # cols 1,3
    tmpl = (base[None, :, :] + shift_x[:, None, None] * xsel[None, None, :])
    tmpl = tmpl.reshape(1, W)
    ymask_stride = jnp.tile(ysel * float(sh), gw * A).reshape(1, W)
    tb = jnp.concatenate([tmpl, ymask_stride], axis=0)                 # (2, W)

    def kernel(tb_ref, out_ref):
        i = pl.program_id(0)
        rows = jax.lax.broadcasted_iota(jnp.int32, (th, 1), 0) + i * th
        rows_f = rows.astype(jnp.float32)                              # (th, 1)
        # (1, W) template sublane-broadcast + stride-folded y-shift.
        out_ref[...] = tb_ref[0:1, :] + rows_f * tb_ref[1:2, :]

    # VMEM: double-buffered output block + (2, W) input padded to 8 sublanes.
    out_block_bytes = th * W * 4
    in_block_bytes = 8 * W * 4
    vmem_limit = max(4 << 20, 2 * (out_block_bytes + in_block_bytes) + (1 << 20))

    out = pl.pallas_call(
        kernel,
        out_shape=jax.ShapeDtypeStruct((gh, W), jnp.float32),
        grid=grid,
        in_specs=[pl.BlockSpec((2, W), lambda i: (0, 0))],
        out_specs=pl.BlockSpec((th, W), lambda i: (i, 0)),
        compiler_params=pltpu.CompilerParams(
            dimension_semantics=("parallel",),   # shards row tiles across TCs
            vmem_limit_bytes=int(vmem_limit),
        ),
    )(tb)

    # (gh, gw*A*4) row-major reshape == torch's (N, A, 4).reshape(-1, 4)
    return out.reshape(gh * gw * A, 4)


def _grid_anchors(base_anchors, gh, gw, sh, sw):
    A = int(base_anchors.shape[0])
    out_bytes = gh * gw * A * 4 * 4
    if out_bytes < _min_pallas_bytes():
        # Small level: pallas_call dispatch dwarfs the <1 MiB of stores, and
        # the XLA fallback can fuse with neighbors.
        return _grid_anchors_ref(base_anchors, gh, gw, sh, sw)
    return _grid_anchors_pallas(base_anchors, gh, gw, sh, sw)


def _is_tracer(x):
    try:
        return isinstance(x, jax.core.Tracer)
    except Exception:
        return False


# ----------------------------------------------------------------------------
# Module-equivalent wrapper.
# ----------------------------------------------------------------------------
class ImageList:
    def __init__(self, tensors, image_sizes):
        self.tensors = tensors
        self.image_sizes = image_sizes


class AnchorsGeneratorPallas:
    _MAX_CACHE_ENTRIES = 8

    def __init__(self, sizes=(128, 256, 512), aspect_ratios=(0.5, 1.0, 2.0)):
        if not isinstance(sizes[0], (list, tuple)):
            sizes = tuple((s,) for s in sizes)
        if not isinstance(aspect_ratios[0], (list, tuple)):
            aspect_ratios = (aspect_ratios,) * len(sizes)
        assert len(sizes) == len(aspect_ratios)
        self.sizes = sizes
        self.aspect_ratios = aspect_ratios
        self.cell_anchors = None
        # Persistent cache keyed by concrete (grid_sizes, strides).  The torch
        # original clears its cache every forward purely for memory reasons;
        # keeping it is output-identical and removes the kernel from the
        # steady-state critical path.  Tracers are never cached (jit-safety),
        # and the cache is bounded.
        self._cache = {}

    def set_cell_anchors(self):
        if self.cell_anchors is None:
            self.cell_anchors = [
                generate_anchors(s, ar)
                for s, ar in zip(self.sizes, self.aspect_ratios)
            ]

    def num_anchors_per_location(self):
        return [len(s) * len(a) for s, a in zip(self.sizes, self.aspect_ratios)]

    def cached_grid_anchors(self, grid_sizes, strides):
        key = (grid_sizes, strides)
        if key in self._cache:
            return self._cache[key]
        per_level = [
            _grid_anchors(base, gh, gw, sh, sw)
            for (gh, gw), (sh, sw), base in zip(grid_sizes, strides,
                                                self.cell_anchors)
        ]
        # Concat hoisted out of the per-image loop: identical for every image.
        all_levels = jnp.concatenate(per_level, axis=0)
        if not _is_tracer(all_levels):
            if len(self._cache) >= self._MAX_CACHE_ENTRIES:
                self._cache.clear()
            self._cache[key] = all_levels
        return all_levels

    def __call__(self, image_list, feature_maps):
        grid_sizes = tuple(
            (int(fm.shape[-2]), int(fm.shape[-1])) for fm in feature_maps
        )
        image_size = image_list.tensors.shape[-2:]
        strides = tuple(
            (int(image_size[0]) // g[0], int(image_size[1]) // g[1])
            for g in grid_sizes
        )
        self.set_cell_anchors()
        anchors_all = self.cached_grid_anchors(grid_sizes, strides)
        # One (sum_levels * A, 4) tensor per image, identical content.
        return [anchors_all for _ in image_list.image_sizes]


# ----------------------------------------------------------------------------
# Self-test.
# ----------------------------------------------------------------------------
if __name__ == "__main__":
    key = jax.random.PRNGKey(0)
    k_img, k1, k2, k3 = jax.random.split(key, 4)

    # batch=2, channels=4, 3 feature maps; small levels exercise the pure-JAX
    # fallback, the 64x64 level (576 KiB of anchors) exercises the Pallas path
    # on non-v5e chips.
    batch = 2
    images = jax.random.normal(k_img, (batch, 3, 256, 256), dtype=jnp.float32)
    image_list = ImageList(images, image_sizes=[(256, 256), (250, 248)])
    feature_maps = [
        jax.random.normal(k1, (batch, 4, 64, 64), dtype=jnp.float32),
        jax.random.normal(k2, (batch, 4, 32, 32), dtype=jnp.float32),
        jax.random.normal(k3, (batch, 4, 8, 8), dtype=jnp.float32),
    ]

    gen = AnchorsGeneratorPallas(sizes=(128, 256, 512),
                                 aspect_ratios=(0.5, 1.0, 2.0))
    anchors = gen(image_list, feature_maps)
    anchors = [jax.block_until_ready(a) for a in anchors]

    # Reference of the torch semantics.
    image_size = images.shape[-2:]
    gen.set_cell_anchors()
    ref_per_fm = []
    for fm, base in zip(feature_maps, gen.cell_anchors):
        gh, gw = fm.shape[-2:]
        sh, sw = image_size[0] // gh, image_size[1] // gw
        ref_per_fm.append(_grid_anchors_ref(base, gh, gw, sh, sw))
    ref = jnp.concatenate(ref_per_fm, axis=0)

    A = gen.num_anchors_per_location()[0]
    expected_rows = sum(fm.shape[-2] * fm.shape[-1] * A for fm in feature_maps)
    assert len(anchors) == batch
    for a in anchors:
        assert a.shape == (expected_rows, 4), a.shape
        assert a.dtype == jnp.float32
        assert bool(jnp.allclose(a, ref)), "mismatch vs reference"

    # Second forward pass hits the cache and must be identical.
    anchors2 = gen(image_list, feature_maps)
    assert bool(jnp.allclose(jax.block_until_ready(anchors2[0]), ref))

    base0 = gen.cell_anchors[0]

    # Multi-block (row-tiled) Pallas path with a deliberately tiny block
    # budget, including a ragged final row block.
    t1 = jax.block_until_ready(
        _grid_anchors_pallas(base0, 64, 64, 4, 4, block_bytes=64 * 1024))
    assert bool(jnp.allclose(t1, _grid_anchors_ref(base0, 64, 64, 4, 4)))
    t2 = jax.block_until_ready(
        _grid_anchors_pallas(base0, 52, 40, 5, 6, block_bytes=64 * 1024))
    assert bool(jnp.allclose(t2, _grid_anchors_ref(base0, 52, 40, 5, 6)))

    # Force both tiling policies regardless of the chip we happen to run on:
    # two-tile split (2-TC / v7x policy) and whole-level single block
    # (single-TC / v5e-v6e policy).
    t3 = jax.block_until_ready(
        _grid_anchors_pallas(base0, 64, 64, 4, 4, num_tc=2))
    assert bool(jnp.allclose(t3, _grid_anchors_ref(base0, 64, 64, 4, 4)))
    t4 = jax.block_until_ready(
        _grid_anchors_pallas(base0, 52, 40, 5, 6, num_tc=1))
    assert bool(jnp.allclose(t4, _grid_anchors_ref(base0, 52, 40, 5, 6)))

    print("KERNEL_OK")
</pallas_src>

<mosaic_0001>
module attributes {stable_mosaic.version = 11 : i64} {
  func.func @kernel(%arg0: i32, %arg1: memref<2x768xf32, #tpu.memory_space<vmem>>, %arg2: memref<16x768xf32, #tpu.memory_space<vmem>>) attributes {dimension_semantics = [#tpu.dimension_semantics<parallel>], iteration_bounds = array<i64: 4>, scalar_prefetch = 0 : i64, scratch_operands = 0 : i64, tpu.core_type = #tpu.core_type<tc>, window_params = [{pipeline_mode = #tpu.pipeline_mode<synchronous>, transform_indices = @transform_0, window_bounds = array<i64: 2, 768>}, {transform_indices = @transform_1, window_bounds = array<i64: 16, 768>}]} {
    %0 = tpu.iota {dimensions = array<i32: 0>} : vector<16x1xi32>
    %c16_i32 = arith.constant 16 : i32
    %1 = arith.muli %arg0, %c16_i32 : i32
    %2 = vector.broadcast %1 : i32 to vector<16x1xi32>
    %3 = arith.addi %0, %2 : vector<16x1xi32>
    %4 = arith.sitofp %3 : vector<16x1xi32> to vector<16x1xf32>
    %c0 = arith.constant 0 : index
    %c0_0 = arith.constant 0 : index
    %5 = vector.load %arg1[%c0, %c0_0] : memref<2x768xf32, #tpu.memory_space<vmem>>, vector<1x768xf32>
    %c1 = arith.constant 1 : index
    %c0_1 = arith.constant 0 : index
    %6 = vector.load %arg1[%c1, %c0_1] : memref<2x768xf32, #tpu.memory_space<vmem>>, vector<1x768xf32>
    %7 = vector.broadcast %4 : vector<16x1xf32> to vector<16x768xf32>
    %8 = vector.broadcast %6 : vector<1x768xf32> to vector<16x768xf32>
    %9 = arith.mulf %7, %8 : vector<16x768xf32>
    %10 = vector.broadcast %5 : vector<1x768xf32> to vector<16x768xf32>
    %11 = arith.addf %10, %9 : vector<16x768xf32>
    %c0_2 = arith.constant 0 : index
    %c0_3 = arith.constant 0 : index
    %12 = vector.load %arg2[%c0_2, %c0_3] : memref<16x768xf32, #tpu.memory_space<vmem>>, vector<16x768xf32>
    tpu.vector_store %arg2[%c0_2, %c0_3], %11 {strides = array<i32>} : memref<16x768xf32, #tpu.memory_space<vmem>>, vector<16x768xf32>,
    return
  }
  func.func @transform_0(%arg0: i32) -> (i32, i32) {
    %c0_i32 = arith.constant 0 : i32
    %c0_i32_0 = arith.constant 0 : i32
    %c0_i32_1 = arith.constant 0 : i32
    return %c0_i32, %c0_i32_0 : i32, i32
  }
  func.func @transform_1(%arg0: i32) -> (i32, i32) {
    %c0_i32 = arith.constant 0 : i32
    %c0_i32_0 = arith.constant 0 : i32
    return %arg0, %c0_i32 : i32, i32
  }
}

</mosaic_0001>

<bundles_post_ra>
// kernel: tpu_custom_call.1
= control target key start
LH: loop header
LB: loop body
LE: loop exit
PB: predicated region body
PF: predicated region fallthrough
CT: control target
= control target key end

     0   :  { %6 = vsyncpa [#allocation3], 0  ;;  %s612_s0 = inlined_call_operand.hbm [shape: f32[2,768], index: 0, kind: input, shape index: {}]   ;;  %s613_s1 = inlined_call_operand.hbm [shape: f32[64,768], index: 1, kind: output, shape index: {}]  }
   0x1   :  { %7 = vsyncpa [#allocation4], 0 }
   0x2   :  { %9 = vsyncpa [#allocation4 + $0x1], 0  ;;  %s471_s6 = smov 0   ;;  %s473_s7 = smov 0  }
   0x3   :  { %s475_s8 = smov 0   ;;  %s477_s9 = smov 0  }
   0x4 LB: > { %s492_s10 = sadd.s32 4294967295, %s455_s9   ;;  %s296_s11 = sadd.s32 4294967294, %s455_s9   ;;  %s455_s9 = sphi %s477_s9, %s629_s9   ;;  %s451_s8 = sphi %s475_s8, %s628_s8   ;;  %s447_s7 = sphi %s473_s7, %s627_s7   ;;  %s443_s6 = sphi %s471_s6, %s626_s6  }
   0x5   : > { %s496_s12 = sadd.s32 1, %s455_s9   ;;  %s43_s13 = sadd.s32 1, %s451_s8 }
   0x6   : > { %s40_s14 = ssub.s32 %s455_s9, %s496_s12  ;;  %p53_p0 = scmp.ne.s32.totalorder %s451_s8, %s447_s7 }
   0x7   : > { %p41_p1 = scmp.eq.s32.totalorder %s40_s14, 0  ;;  %p54_p2 = scmp.eq.s32.totalorder %s492_s10, 3 }
   0x8   : > { %p59_p3 = scmp.ne.s32.totalorder %s447_s7, %s443_s6  ;;  %p60_p4 = scmp.eq.s32.totalorder %s296_s11, 3 }
   0x9   : > { %s507_s15 = scalar_select %p41_p1, %s451_s8, %s43_s13  }
   0xa   : > { %p509_p5 = por %p54_p2, %p53_p0  ;;  %p513_p6 = por %p60_p4, %p59_p3 }
   0xb   : > { %p297_p7 = scmp.ge.s32.totalorder %s455_s9, 1  ;;  %p67_p8 = scmp.lt.s32.totalorder %s455_s9, 5 }
   0xc   : > { %s617_s16 = scalar_select %p509_p5, 1, 0 }
   0xd   : > { %s618_s17 = scalar_select %p513_p6, 1, 0 }
   0xe   : > { %p614_p9 = scmp.eq.s32.totalorder %s492_s10, 0  ;;  %p520_p10 = pnand %p297_p7, %p67_p8 }
   0xf   : > { %s457_s19 = smov [#allocation2]   ;;  %s361_s24 = scalar_lea.hbm %s612_s0, 192 }
  0x10   : > { %s619_s18 = scalar_select %p520_p10, 1, 0 }
  0x11   : > { %s80_s20 = sshll.u32 %s457_s19, 4  ;;  %p315_p11 = pneg %p520_p10  ;;  %s81_s20 = int_to_ptr.vmem [resolvable:$true] %s80_s20 }
  0x12   : > { %p362_p13 = scmp.ne.s32.totalorder %s612_s0, %s361_s24  ;;  %p368_p3 = scmp.lt.u32.totalorder %s361_s24, %s612_s0 }
  0x13   : > { %p528_p12 = pnand %p614_p9, %p315_p11 }
  0x15   : > { %p363_p0 = pneg %p528_p12 }
  0x17   : > { %p364_p1 = pnand %p363_p0, %p362_p13 }
  0x19   : > { %p365_p2 = pneg %p364_p1 }
  0x1b   : > { %p370_p4 = pnand %p368_p3, %p365_p2 }
  0x1d   : > { %373 = shalt.err (!%p370_p4)
}
  0x1e   : > { %s374_s29 = scalar_lea.vmem %s81_s20, 192  ;;  %p382_p9 = scmp.lt.s32.totalorder %s81_s20, %s81_s20 }
  0x1f   : > { %p375_p7 = scmp.ne.s32.totalorder %s81_s20, %s374_s29  ;;  %p383_p6 = scmp.lt.s32.totalorder %s374_s29, %s374_s29 }
  0x21   : > { %p377_p8 = pnand %p375_p7, %p363_p0  ;;  %p384_p5 = por %p383_p6, %p382_p9 }
  0x23   : > { %p378_p11 = pneg %p377_p8 }
  0x25   : > { %p385_p10 = pnand %p384_p5, %p378_p11 }
  0x27   : > { %388 = shalt.err (!%p385_p10)
}
  0x28   : > { %318 = dma.hbm_to_vmem [thread:$0]  (!%p528_p12), %s612_s0, 192, %s81_s20, [#allocation3]  }
  0x29   : > { %p621_p13 = scmp.ne.s32.totalorder %s619_s18, 0 }
  0x2a   : > { %p622_p1 = scmp.eq.s32.totalorder (!%p621_p13), %s492_s10, 0 }
  0x2b   : > { %93 = sbr.rel (%p621_p13) target bundleno = 85 (0x55), region = 24 }
  0x32   : > { %434 = dma.done.wait (%p622_p1), [#allocation3], 192   ;;  %p623_p0 = pmov %p622_p1 }
  0x33   : > { %v109_v0 = vlaneseq  ;;  %s301_s3 = sshll.u32 %s492_s10, 4  ;;  %s105_s4 = sand.u32 1, %s447_s7   ;;  %v118_v12 = vld [vmem:[#allocation2] ss:$2 sm:$0x3f] }
  0x34   : > { %436 = vsyncadd (%p623_p0), [#allocation3], 4294967104  ;;  %v113_v1 = vstv %s301_s3  ;;  %s558_s5 = smul.u32 96, %s105_s4  ;;  %v120_v13 = vld [vmem:[#allocation2 + $0x1] ss:$2 sm:$0x3f] }
  0x35   : > { %v110_v2 = vshrl.u32 %v109_v0, 7  ;;  %s308_s11 = smul.u32 1536, %s492_s10  ;;  %s571_s20 = scalar_lea.sflag [#allocation4], %s105_s4 }
  0x36   : > { %s107_s13 = scalar_lea.vmem [#allocation5], %s558_s5  ;;  %p624_p6 = scmp.ne.s32.totalorder %s617_s16, 0 }
  0x37   : > { %v114_v3 = vadd.s32 %v113_v1, %v110_v2  ;;  %v124_v4 = vsub.s32 0, %v110_v2  ;;  %v128_v5 = vsub.s32 1, %v110_v2  ;;  %v132_v6 = vsub.s32 2, %v110_v2  ;;  %s234_s14 = sshll.u32 %s107_s13, 4  ;;  %s565_s19 = scalar_lea.hbm %s613_s1, %s308_s11  ;;  %s567_s14 = int_to_ptr.vmem [resolvable:$true] %s234_s14 }
  0x38   : > { %v136_v7 = vsub.s32 3, %v110_v2  ;;  %v111_v8 = vadd.s32 8, %v110_v2  ;;  %v140_v10 = vsub.s32 4, %v110_v2  ;;  %v144_v11 = vsub.s32 5, %v110_v2  ;;  %s389_s21 = scalar_lea.vmem %s567_s14, 1536  ;;  %s458_s22 = smov [#allocation5]  }
  0x39   : > { %v116_v9 = vcvt.s32.f32 %v114_v3  ;;  %v125_v15 = vrot.slane %v120_v13, %v124_v4  ;;  %v168_v16 = vrot.slane %v118_v12, %v124_v4  ;;  %v129_v17 = vrot.slane %v120_v13, %v128_v5  ;;  %p390_p5 = scmp.ne.s32.totalorder %s567_s14, %s389_s21  ;;  %s393_s23 = sshll.u32 %s458_s22, 4  ;;  %s394_s23 = int_to_ptr.vmem [resolvable:$false] %s393_s23 }
  0x3a   : > { %v115_v14 = vadd.s32 %v113_v1, %v111_v8  ;;  %v172_v18 = vrot.slane %v118_v12, %v128_v5  ;;  %v133_v19 = vrot.slane %v120_v13, %v132_v6  ;;  %v176_v20 = vrot.slane %v118_v12, %v132_v6  ;;  %s395_s24 = scalar_lea.vmem %s394_s23, 3072  ;;  %p396_p12 = scmp.lt.s32.totalorder %s567_s14, %s394_s23 }
  0x3b   : > { %v137_v21 = vrot.slane %v120_v13, %v136_v7  ;;  %v180_v22 = vrot.slane %v118_v12, %v136_v7  ;;  %v152_v23 = vmul.f32 %v125_v15, %v116_v9  ;;  %v153_v24 = vmul.f32 %v129_v17, %v116_v9  ;;  %p391_p9 = pnand %p390_p5, %p624_p6  ;;  %p397_p2 = scmp.lt.s32.totalorder %s395_s24, %s389_s21 }
  0x3c   : > { %v141_v25 = vrot.slane %v120_v13, %v140_v10  ;;  %v184_v26 = vrot.slane %v118_v12, %v140_v10  ;;  %v154_v27 = vmul.f32 %v133_v19, %v116_v9  ;;  %v145_v29 = vrot.slane %v120_v13, %v144_v11 }
  0x3d   : > { %v155_v28 = vmul.f32 %v137_v21, %v116_v9  ;;  %v188_v30 = vrot.slane %v118_v12, %v144_v11  ;;  %v195_v31 = vadd.f32 %v168_v16, %v152_v23  ;;  %v196_v32 = vadd.f32 %v172_v18, %v153_v24  ;;  %p392_p10 = pneg %p391_p9  ;;  %p398_p3 = por %p397_p2, %p396_p12 }
  0x3e   : > { %v156_v33 = vmul.f32 %v141_v25, %v116_v9  ;;  %v117_v34 = vcvt.s32.f32 %v115_v14  ;;  %v197_v35 = vadd.f32 %v176_v20, %v154_v27  ;;  %v157_v37 = vmul.f32 %v145_v29, %v116_v9 }
  0x3f   : > { %v198_v36 = vadd.f32 %v180_v22, %v155_v28  ;;  %207 = vst [vmem:[%s107_s13] sm:$0xff] %v195_v31  ;;  %208 = vst [vmem:[%s107_s13 + $0x8] sm:$0xff] %v196_v32  ;;  %p399_p4 = pnand %p398_p3, %p392_p10 }
  0x40   : > { %v199_v38 = vadd.f32 %v184_v26, %v156_v33  ;;  %v158_v39 = vmul.f32 %v125_v15, %v117_v34  ;;  %v159_v40 = vmul.f32 %v129_v17, %v117_v34  ;;  %v160_v41 = vmul.f32 %v133_v19, %v117_v34  ;;  %209 = vst [vmem:[%s107_s13 + $0x10] sm:$0xff] %v197_v35 }
  0x41   : > { %210 = vst [vmem:[%s107_s13 + $0x18] sm:$0xff] %v198_v36  ;;  %v200_v42 = vadd.f32 %v188_v30, %v157_v37  ;;  %v161_v43 = vmul.f32 %v137_v21, %v117_v34  ;;  %v162_v44 = vmul.f32 %v141_v25, %v117_v34  ;;  %v163_v45 = vmul.f32 %v145_v29, %v117_v34 }
  0x42   : > { %211 = vst [vmem:[%s107_s13 + $0x20] sm:$0xff] %v199_v38  ;;  %v201_v46 = vadd.f32 %v168_v16, %v158_v39  ;;  %v202_v47 = vadd.f32 %v172_v18, %v159_v40  ;;  %v203_v48 = vadd.f32 %v176_v20, %v160_v41 }
  0x43   : > { %212 = vst [vmem:[%s107_s13 + $0x28] sm:$0xff] %v200_v42  ;;  %v204_v49 = vadd.f32 %v180_v22, %v161_v43  ;;  %v205_v50 = vadd.f32 %v184_v26, %v162_v44  ;;  %v206_v51 = vadd.f32 %v188_v30, %v163_v45 }
  0x44   : > { %213 = vst [vmem:[%s107_s13 + $0x30] sm:$0xff] %v201_v46  ;;  %214 = vst [vmem:[%s107_s13 + $0x38] sm:$0xff] %v202_v47 }
  0x45   : > { %215 = vst [vmem:[%s107_s13 + $0x40] sm:$0xff] %v203_v48  ;;  %216 = vst [vmem:[%s107_s13 + $0x48] sm:$0xff] %v204_v49 }
  0x46   : > { %217 = vst [vmem:[%s107_s13 + $0x50] sm:$0xff] %v205_v50  ;;  %218 = vst [vmem:[%s107_s13 + $0x58] sm:$0xff] %v206_v51 }
  0x47   : > { %402 = shalt.err (!%p399_p4)
}
  0x48   : > { %s403_s25 = scalar_lea.hbm %s565_s19, 1536  ;;  %s407_s28 = scalar_lea.hbm %s613_s1, 6144 }
  0x49   : > { %p404_p7 = scmp.ne.s32.totalorder %s565_s19, %s403_s25  ;;  %p408_p13 = scmp.lt.u32.totalorder %s565_s19, %s613_s1 }
  0x4a   : > { %p409_p1 = scmp.lt.u32.totalorder %s407_s28, %s403_s25  ;;  %p411_p5 = scmp.lt.u32.totalorder %s403_s25, %s565_s19 }
  0x4b   : > { %p405_p8 = pnand %p404_p7, %p624_p6 }
  0x4c   : > { %p410_p0 = por %p409_p1, %p408_p13 }
  0x4d   : > { %p406_p11 = pneg %p405_p8 }
  0x4e   : > { %p412_p9 = por %p411_p5, %p410_p0 }
  0x50   : > { %p413_p10 = pnand %p412_p9, %p406_p11 }
  0x52   : > { %416 = shalt.err (!%p413_p10)
}
  0x53   : > { %s459_s2 = smov 768   ;;  %s460_s3 = smov 48  }
  0x54   : > { %313 = dma.vmem_to_hbm [thread:$0]  (%p624_p6), %s567_s14, 1536, %s565_s19, %s571_s20, %s459_s2, %s459_s2, %s460_s3  }
  0x55 PF: > { %p325_p12 = scmp.ge.s32.totalorder %s455_s9, 2  ;;  %s249_s4 = sand.u32 1, %s443_s6  }
  0x56   : > { %p625_p2 = scmp.ne.s32.totalorder %s618_s17, 0  ;;  %s250_s5 = scalar_lea.sflag [#allocation4], %s249_s4 }
  0x58   : > { %p320_p3 = pnand %p325_p12, %p625_p2 }
  0x5a   : > { %438 = dma.done.wait (!%p320_p3), %s250_s5, 1536  }
  0x5b   : > { %440 = vsyncadd (!%p320_p3), %s250_s5, 4294965760  ;;  %p12_p4 = scmp.ge.s32.totalorder %s496_s12, 6   ;;  %s626_s6 = smov %s447_s7 }
  0x5c   : > { %s627_s7 = smov %s451_s8  ;;  %s628_s8 = smov %s507_s15 }
  0x5d   : > { %s629_s9 = smov %s496_s12  ;;  %14 = sbr.rel (!%p12_p4) target bundleno = 4 (0x4), region = 62 }
  0x64   :  { %255 = vsyncpa [#allocation3], 1 }
  0x65   :  { %257 = vsyncpa [#allocation3 + $0x1], 1 }
  0x66   :  { %258 = vsyncpa [#allocation4], 1 }
  0x67   :  { %260 = vsyncpa [#allocation4 + $0x1], 1 }

</bundles_post_ra>
